<compile_context>
chip_gen: v5e
topology: v5e:2x2
jax: 0.10.0
libtpu: 0.0.40
codegen_flags: <defaults>
</compile_context>

<pallas_src>
import math

import jax
import jax.numpy as jnp
from jax.experimental import pallas as pl
from jax.experimental.pallas import tpu as pltpu

_LANE = 128      # last-dim alignment
_SUBLANE = 8     # second-to-last-dim alignment
_TK = 2048       # K tile cap; K is padded at init to a multiple of this only when K > _TK


def _round_up(x, m):
    return ((x + m - 1) // m) * m


def _pick_divisor_tile(dim, cap, align):
    """Largest multiple of `align` that divides `dim` and is <= cap.

    `dim` is assumed to be a multiple of `align`.
    """
    best = align
    t = align
    limit = min(cap, dim)
    while t <= limit:
        if dim % t == 0:
            best = t
        t += align
    return best


def _dense_kernel_1k(x_ref, w_ref, b_ref, o_ref):
    # Single K tile: no accumulator scratch, fused matmul + bias + cast.
    acc = jnp.dot(x_ref[...], w_ref[...], preferred_element_type=jnp.float32)
    o_ref[...] = (acc + b_ref[...].astype(jnp.float32)).astype(o_ref.dtype)


def _dense_kernel_multik(x_ref, w_ref, b_ref, o_ref, acc_ref):
    # grid = (M//tm, N//tn, K//tk); K (axis 2) is the sequential reduction
    # ("arbitrary"), and out_specs revisits the same (i, j) block across k.
    k = pl.program_id(2)
    prod = jnp.dot(x_ref[...], w_ref[...], preferred_element_type=jnp.float32)

    @pl.when(k == 0)
    def _init():
        acc_ref[...] = prod          # write, not zero-init + += (saves a round trip)

    @pl.when(k > 0)
    def _accum():
        acc_ref[...] += prod

    @pl.when(k == pl.num_programs(2) - 1)
    def _finalize():
        o_ref[...] = (
            acc_ref[...] + b_ref[...].astype(jnp.float32)
        ).astype(o_ref.dtype)


def dense_forward(x, params, *, tm=256, tn=512):
    """Dense forward.

    x:      [B, input_dim]
    params: dict from init_dense_params with
              "w_t":  [Kp, Np]  weight, pre-transposed + pre-padded at init
              "bias": [1, Np]   f32 bias, pre-padded at init
              "out_dim": true output_dim (N)
    returns [B, output_dim, 1, 1]   (matches `linear(x)[..., None, None]`)
    """
    w_t = params["w_t"]
    b2d = params["bias"]
    N = params["out_dim"]

    B, K = x.shape
    Kp, Np = w_t.shape
    assert Kp >= K and b2d.shape == (1, Np), (x.shape, w_t.shape, b2d.shape)
    out_dtype = x.dtype

    # --- tile selection -----------------------------------------------------
    tm = min(tm, _round_up(B, _SUBLANE))
    Mp = _round_up(B, tm)

    tn = _pick_divisor_tile(Np, tn, _LANE)
    # Keep >= 2 blocks along N when possible so both v7x TensorCores get work
    # (with tiny B the M axis is a single block, so N is the only parallel axis).
    if Np == tn and tn % (2 * _LANE) == 0:
        tn //= 2

    # init_dense_params guarantees Kp % _TK == 0 whenever Kp > _TK.
    tk = Kp if Kp <= _TK else _TK

    # Only the (tiny) activation is padded per call; weight/bias were padded at init.
    if (Mp, Kp) != (B, K):
        x = jnp.pad(x, ((0, Mp - B), (0, Kp - K)))

    grid_m, grid_n, grid_k = Mp // tm, Np // tn, Kp // tk

    # --- scheduler hint (per-operand itemsizes) -------------------------------
    cost = pl.CostEstimate(
        flops=2 * Mp * Kp * Np,
        transcendentals=0,
        bytes_accessed=(
            Mp * Kp * jnp.dtype(x.dtype).itemsize
            + Kp * Np * jnp.dtype(w_t.dtype).itemsize
            + Np * jnp.dtype(b2d.dtype).itemsize
            + Mp * Np * jnp.dtype(out_dtype).itemsize
        ),
    )

    vmem_limit = 32 * 1024 * 1024  # safe on v7x (64 MiB physical); plenty on v5e/v6e

    if grid_k == 1:
        # Common SD time-embedding case (K <= 2048): no accumulator needed.
        y = pl.pallas_call(
            _dense_kernel_1k,
            out_shape=jax.ShapeDtypeStruct((Mp, Np), out_dtype),
            grid_spec=pltpu.PrefetchScalarGridSpec(
                num_scalar_prefetch=0,
                grid=(grid_m, grid_n),
                in_specs=[
                    pl.BlockSpec((tm, Kp), lambda i, j: (i, 0)),
                    pl.BlockSpec((Kp, tn), lambda i, j: (0, j)),
                    pl.BlockSpec((1, tn), lambda i, j: (0, j)),
                ],
                out_specs=pl.BlockSpec((tm, tn), lambda i, j: (i, j)),
            ),
            compiler_params=pltpu.CompilerParams(
                dimension_semantics=("parallel", "parallel"),
                vmem_limit_bytes=vmem_limit,
            ),
            cost_estimate=cost,
        )(x, w_t, b2d)
    else:
        y = pl.pallas_call(
            _dense_kernel_multik,
            out_shape=jax.ShapeDtypeStruct((Mp, Np), out_dtype),
            grid_spec=pltpu.PrefetchScalarGridSpec(
                num_scalar_prefetch=0,
                grid=(grid_m, grid_n, grid_k),
                in_specs=[
                    pl.BlockSpec((tm, tk), lambda i, j, k: (i, k)),
                    pl.BlockSpec((tk, tn), lambda i, j, k: (k, j)),
                    pl.BlockSpec((1, tn), lambda i, j, k: (0, j)),
                ],
                out_specs=pl.BlockSpec((tm, tn), lambda i, j, k: (i, j)),
                scratch_shapes=[pltpu.VMEM((tm, tn), jnp.float32)],
            ),
            compiler_params=pltpu.CompilerParams(
                dimension_semantics=("parallel", "parallel", "arbitrary"),
                vmem_limit_bytes=vmem_limit,
            ),
            cost_estimate=cost,
        )(x, w_t, b2d)

    # Strip padding, then add trailing spatial dims to match `[..., None, None]`.
    return y[:B, :N, None, None]


def init_dense_params(key, input_dim, output_dim, dtype=jnp.float32):
    """nn.Linear-style init (uniform +/- 1/sqrt(in_dim)).

    The weight is stored PRE-TRANSPOSED as [input_dim, output_dim] and padded
    ONCE here (K to a sublane / K-tile multiple, N to a lane multiple), so
    dense_forward never pads or copies the weight in the hot path.  Pass
    dtype=jnp.bfloat16 to halve the dominant weight HBM stream (accumulation
    stays f32 in the kernel); bias is kept in f32.
    """
    k_w, k_b = jax.random.split(key)
    bound = 1.0 / math.sqrt(input_dim)
    w_t = jax.random.uniform(
        k_w, (input_dim, output_dim), dtype=jnp.float32,
        minval=-bound, maxval=bound,
    ).astype(dtype)
    bias = jax.random.uniform(
        k_b, (output_dim,), dtype=jnp.float32, minval=-bound, maxval=bound
    )

    Kp = _round_up(input_dim, _SUBLANE)
    if Kp > _TK:
        Kp = _round_up(input_dim, _TK)
    Np = _round_up(output_dim, _LANE)

    w_t = jnp.pad(w_t, ((0, Kp - input_dim), (0, Np - output_dim)))
    b2d = jnp.pad(bias.reshape(1, output_dim), ((0, 0), (0, Np - output_dim)))
    return {"w_t": w_t, "bias": b2d, "out_dim": output_dim}


if __name__ == "__main__":
    key = jax.random.PRNGKey(0)
    k_x, k_p = jax.random.split(key)

    batch, input_dim, output_dim = 2, 32, 64
    x = jax.random.normal(k_x, (batch, input_dim), dtype=jnp.float32)
    params = init_dense_params(k_p, input_dim, output_dim)

    y = dense_forward(x, params)
    y = jax.block_until_ready(y)

    # Reference check against plain JAX (same math as nn.Linear); padded
    # weight/bias columns are zeros, so slicing recovers the true parameters.
    w_ref = params["w_t"][:input_dim, :output_dim]
    b_ref = params["bias"][0, :output_dim]
    y_ref = (x @ w_ref + b_ref)[..., None, None]

    assert y.shape == (batch, output_dim, 1, 1), y.shape
    assert jnp.allclose(y, y_ref, atol=1e-5, rtol=1e-5)

    print("KERNEL_OK")
</pallas_src>

<mosaic_0001>
module attributes {stable_mosaic.version = 11 : i64} {
  func.func @_dense_kernel_1k(%arg0: i32, %arg1: i32, %arg2: memref<8x32xf32, #tpu.memory_space<vmem>>, %arg3: memref<32x128xf32, #tpu.memory_space<vmem>>, %arg4: memref<1x128xf32, #tpu.memory_space<vmem>>, %arg5: memref<8x128xf32, #tpu.memory_space<vmem>>) attributes {dimension_semantics = [#tpu.dimension_semantics<parallel>, #tpu.dimension_semantics<parallel>], iteration_bounds = array<i64: 1, 1>, scalar_prefetch = 0 : i64, scratch_operands = 0 : i64, tpu.core_type = #tpu.core_type<tc>, window_params = [{transform_indices = @transform_0, window_bounds = array<i64: 8, 32>}, {transform_indices = @transform_1, window_bounds = array<i64: 32, 128>}, {transform_indices = @transform_2, window_bounds = array<i64: 1, 128>}, {transform_indices = @transform_3, window_bounds = array<i64: 8, 128>}]} {
    %c0 = arith.constant 0 : index
    %c0_0 = arith.constant 0 : index
    %0 = vector.load %arg2[%c0, %c0_0] : memref<8x32xf32, #tpu.memory_space<vmem>>, vector<8x32xf32>
    %c0_1 = arith.constant 0 : index
    %c0_2 = arith.constant 0 : index
    %1 = vector.load %arg3[%c0_1, %c0_2] : memref<32x128xf32, #tpu.memory_space<vmem>>, vector<32x128xf32>
    %cst = arith.constant dense<0.000000e+00> : vector<8x128xf32>
    %2 = tpu.matmul %0, %1, %cst {dimension_numbers = #tpu.dot_dimension_numbers<[1], [0], [0], [1], [0, 0, 1, 1], [], []>} : vector<8x32xf32>, vector<32x128xf32>, vector<8x128xf32> -> vector<8x128xf32>
    %c0_3 = arith.constant 0 : index
    %c0_4 = arith.constant 0 : index
    %3 = vector.load %arg4[%c0_3, %c0_4] : memref<1x128xf32, #tpu.memory_space<vmem>>, vector<1x128xf32>
    %4 = vector.broadcast %3 : vector<1x128xf32> to vector<8x128xf32>
    %5 = arith.addf %2, %4 : vector<8x128xf32>
    %c0_5 = arith.constant 0 : index
    %c0_6 = arith.constant 0 : index
    %6 = vector.load %arg5[%c0_5, %c0_6] : memref<8x128xf32, #tpu.memory_space<vmem>>, vector<8x128xf32>
    tpu.vector_store %arg5[%c0_5, %c0_6], %5 {strides = array<i32>} : memref<8x128xf32, #tpu.memory_space<vmem>>, vector<8x128xf32>,
    return
  }
  func.func @transform_0(%arg0: i32, %arg1: i32) -> (i32, i32) {
    %c0_i32 = arith.constant 0 : i32
    %c0_i32_0 = arith.constant 0 : i32
    return %arg0, %c0_i32 : i32, i32
  }
  func.func @transform_1(%arg0: i32, %arg1: i32) -> (i32, i32) {
    %c0_i32 = arith.constant 0 : i32
    %c0_i32_0 = arith.constant 0 : i32
    return %c0_i32, %arg1 : i32, i32
  }
  func.func @transform_2(%arg0: i32, %arg1: i32) -> (i32, i32) {
    %c0_i32 = arith.constant 0 : i32
    %c0_i32_0 = arith.constant 0 : i32
    return %c0_i32, %arg1 : i32, i32
  }
  func.func @transform_3(%arg0: i32, %arg1: i32) -> (i32, i32) {
    %c0_i32 = arith.constant 0 : i32
    return %arg0, %arg1 : i32, i32
  }
}

</mosaic_0001>

<bundles_post_ra>
// kernel: tpu_custom_call.1
= control target key start
LH: loop header
LB: loop body
LE: loop exit
PB: predicated region body
PF: predicated region fallthrough
CT: control target
= control target key end

     0   :  { %8 = vsyncpa [#allocation3], 0  ;;  %s219_s0 = inlined_call_operand.hbm [shape: f32[8,32], index: 0, kind: input, shape index: {}]   ;;  %s220_s1 = inlined_call_operand.hbm [shape: f32[32,128], index: 1, kind: input, shape index: {}]   ;;  %s221_s2 = inlined_call_operand.vmem [shape: f32[1,128], index: 2, kind: input, shape index: {}]   ;;  %s222_s3 = inlined_call_operand.hbm [shape: f32[8,128], index: 3, kind: output, shape index: {}]  }
   0x1   :  { %9 = vsyncpa [#allocation6], 0 }
   0x2   :  { %10 = vsyncpa [#allocation4], 0  ;;  %s16_s14 = sshll.u32 %s219_s0, 4  ;;  %s182_s15 = smov [#allocation2]   ;;  %s17_s14 = int_to_ptr.hbm [resolvable:$true] %s16_s14 }
   0x3   :  { %s18_s16 = sshll.u32 %s182_s15, 4  ;;  %s26_s19 = sshll.u32 %s220_s1, 4  ;;  %s19_s16 = int_to_ptr.vmem [resolvable:$true] %s18_s16  ;;  %s27_s19 = int_to_ptr.hbm [resolvable:$true] %s26_s19 }
   0x4   :  { %21 = dma.hbm_to_vmem [thread:$0]  %s17_s14, 128, %s19_s16, [#allocation3]  }
   0x5   :  { %s183_s20 = smov [#allocation5]   ;;  %s184_s22 = smov 128  }
   0x6   :  { %s28_s21 = sshll.u32 %s183_s20, 4  ;;  %s185_s23 = smov 8   ;;  %s29_s21 = int_to_ptr.vmem [resolvable:$true] %s28_s21 }
   0x7   :  { %34 = dma.hbm_to_vmem [thread:$0]  %s27_s19, 512, %s29_s21, [#allocation6], %s184_s22, %s184_s22, %s185_s23  }
   0x8   :  { %176 = dma.done.wait [#allocation3], 128  }
   0x9   :  { %177 = vsyncadd [#allocation3], 4294967168 }
   0xa   :  { %178 = dma.done.wait [#allocation6], 512  }
   0xb   :  { %179 = vsyncadd [#allocation6], 4294966784  ;;  %v49_v0 = vld [vmem:[#allocation5 + $0x18] sm:$0xff]  ;;  %v48_v1 = vld [vmem:[#allocation5 + $0x10] sm:$0xff]  ;;  %vm54_vm0 = vcmask 261120   ;;  %s186_s24 = smov [#allocation7]  }
   0xc   :  { %70 = vmatpush.msra.mxu0 %v49_v0  ;;  %v47_v2 = vld [vmem:[#allocation5 + $0x8] sm:$0xff]  ;;  %v46_v3 = vld [vmem:[#allocation5] sm:$0xff]  ;;  %v45_v4 = vld [vmem:[#allocation2] sm:$0xff]  ;;  %s84_s25 = sshll.u32 %s186_s24, 4  ;;  %s86_s28 = sshll.u32 %s222_s3, 4  ;;  %s85_s25 = int_to_ptr.vmem [resolvable:$true] %s84_s25  ;;  %s87_s28 = int_to_ptr.hbm [resolvable:$true] %s86_s28 }
   0xd   :  { %v103_v5 = vld [vmem:[%s221_s2] ss:$0 sm:$0xff] }
   0xe   :  { %71 = vmatpush.msra.mxu0 %v48_v1 }
  0x10   :  { %72 = vmatpush.msra.mxu0 %v47_v2 }
  0x12   :  { %73 = vmatpush.msra.mxu0 %v46_v3 }
  0x13   :  { %97 = vmatmul.msk.f32.vlgmr.msra.gmra.mxu0 %vm54_vm0, %v45_v4 }
  0x90   :  { %v75_v6 = vpop.f32.mrf.mxu0 }
  0x91   :  { %v76_v7 = vadd.f32 %v103_v5, %v75_v6 }
  0x93   :  { %78 = vst [vmem:[#allocation7] sm:$0xff] %v76_v7 }
  0x94   :  { %89 = dma.vmem_to_hbm [thread:$0]  %s85_s25, 128, %s87_s28, [#allocation4]  }
  0x95   :  { %180 = dma.done.wait [#allocation4], 128  }
  0x96   :  { %181 = vsyncadd [#allocation4], 4294967168 }
  0x97   :  { %94 = vsyncpa [#allocation3], 1 }
  0x98   :  { %95 = vsyncpa [#allocation6], 1 }
  0x99   :  { %96 = vsyncpa [#allocation4], 1 }

</bundles_post_ra>
